<compile_context>
chip_gen: v5e
topology: v5e:2x2
jax: 0.10.0
libtpu: 0.0.40
codegen_flags: <defaults>
</compile_context>

<pallas_src>
import math
import functools

import jax
import jax.numpy as jnp
from jax.experimental import pallas as pl
from jax.experimental.pallas import tpu as pltpu

# ---------------- config (small shapes consistent with the module) ----------------
B = 2      # batch
S = 8      # sequence length
D = 32     # d_model
H = 4      # attention heads


# ------------------------------- Pallas kernel -------------------------------
def mha_kernel(q_ref, k_ref, v_ref,
               wq_ref, bq_ref, wk_ref, bk_ref, wv_ref, bv_ref,
               wo_ref, bo_ref,
               o_ref, ctx_ref, *, batch, num_heads):
    bs, d_model = q_ref.shape                 # (B*S, D)
    seq = bs // batch
    dh = d_model // num_heads
    inv_sqrt_dh = 1.0 / math.sqrt(dh)

    # ---- fused q/k/v projections over ALL tokens: (B*S, D) @ (D, D) on the MXU ----
    q = jnp.dot(q_ref[...], wq_ref[...], preferred_element_type=jnp.float32) + bq_ref[...]
    k = jnp.dot(k_ref[...], wk_ref[...], preferred_element_type=jnp.float32) + bk_ref[...]
    v = jnp.dot(v_ref[...], wv_ref[...], preferred_element_type=jnp.float32) + bv_ref[...]

    # fold the 1/sqrt(d_k) score scale into q once (single VPU mul on the slab)
    q = q * inv_sqrt_dh

    # metadata-only reshapes: lane dim unchanged, sublane dims stay multiples of 8
    q3 = q.reshape(batch, seq, d_model)
    k3 = k.reshape(batch, seq, d_model)
    v3 = v.reshape(batch, seq, d_model)

    # ---- attention: static unroll over heads, batched over B inside each einsum ----
    for h in range(num_heads):
        sl = slice(h * dh, (h + 1) * dh)
        qh = q3[:, :, sl]                      # (B, S, dh)
        kh = k3[:, :, sl]
        vh = v3[:, :, sl]
        s = jnp.einsum("bqd,bkd->bqk", qh, kh,
                       preferred_element_type=jnp.float32)        # (B, S, S)
        # TODO(synk): optional attention mask (masked_fill) not implemented; mask=None path only.
        s = s - jnp.max(s, axis=-1, keepdims=True)
        p = jnp.exp(s)
        # softmax denominator via EUP approx reciprocal (free slot) instead of a VALU divide
        p = p * pl.reciprocal(jnp.sum(p, axis=-1, keepdims=True), approx=True)
        # TODO(synk): nn.Dropout(p=0.1) on the attention probs is identity at inference; omitted.
        ctx_ref[:, :, sl] = jnp.einsum("bqk,bkd->bqd", p, vh,
                                       preferred_element_type=jnp.float32)

    # ---- single concat-then-project output matmul: (B*S, D) @ (D, D) ----
    ctx = ctx_ref[...].reshape(bs, d_model)
    o_ref[...] = jnp.dot(ctx, wo_ref[...],
                         preferred_element_type=jnp.float32) + bo_ref[...]


# ------------------------------- Python wrapper -------------------------------
def multi_head_attention(query, key, value, params, *, num_heads=H):
    b, s, d = query.shape
    flat = lambda x: x.reshape(b * s, d)
    weights = [params["wq"], params["bq"], params["wk"], params["bk"],
               params["wv"], params["bv"], params["wo"], params["bo"]]
    out = pl.pallas_call(
        functools.partial(mha_kernel, batch=b, num_heads=num_heads),
        out_shape=jax.ShapeDtypeStruct((b * s, d), jnp.float32),
        scratch_shapes=[pltpu.VMEM((b, s, d), jnp.float32)],   # per-head context slab
    )(flat(query), flat(key), flat(value), *weights)
    return out.reshape(b, s, d)


# ----------------------------- pure-JAX reference -----------------------------
def reference_mha(query, key, value, params, *, num_heads=H):
    b, s, d = query.shape
    dh = d // num_heads
    q = query.reshape(b * s, d) @ params["wq"] + params["bq"]
    k = key.reshape(b * s, d) @ params["wk"] + params["bk"]
    v = value.reshape(b * s, d) @ params["wv"] + params["bv"]
    qh = q.reshape(b, s, num_heads, dh).transpose(0, 2, 1, 3)
    kh = k.reshape(b, s, num_heads, dh).transpose(0, 2, 1, 3)
    vh = v.reshape(b, s, num_heads, dh).transpose(0, 2, 1, 3)
    scores = jnp.einsum("bhqd,bhkd->bhqk", qh, kh) / math.sqrt(dh)
    probs = jax.nn.softmax(scores, axis=-1)
    ctx = jnp.einsum("bhqk,bhkd->bhqd", probs, vh)
    ctx = ctx.transpose(0, 2, 1, 3).reshape(b * s, d)
    return (ctx @ params["wo"] + params["bo"]).reshape(b, s, d)


# --------------------------- deterministic parameters --------------------------
def make_params(key):
    ks = jax.random.split(key, 8)

    def w(k, shape, scale):
        return (scale * jax.random.normal(k, shape)).astype(jnp.float32)

    # weights stored as (in, out) so forward is x @ W + b
    # (equivalent to a PyTorch nn.Linear whose weight is W.T)
    return dict(
        wq=w(ks[0], (D, D), 0.05), bq=w(ks[1], (1, D), 0.01),
        wk=w(ks[2], (D, D), 0.05), bk=w(ks[3], (1, D), 0.01),
        wv=w(ks[4], (D, D), 0.05), bv=w(ks[5], (1, D), 0.01),
        wo=w(ks[6], (D, D), 0.05), bo=w(ks[7], (1, D), 0.01),
    )


# ------------------------------------ main ------------------------------------
if __name__ == "__main__":
    root = jax.random.PRNGKey(0)
    kq, kk, kv, kp = jax.random.split(root, 4)
    query = jax.random.normal(kq, (B, S, D), dtype=jnp.float32)
    key_in = jax.random.normal(kk, (B, S, D), dtype=jnp.float32)
    value = jax.random.normal(kv, (B, S, D), dtype=jnp.float32)
    params = make_params(kp)

    out = multi_head_attention(query, key_in, value, params)
    out = jax.block_until_ready(out)

    ref = reference_mha(query, key_in, value, params)
    assert out.shape == (B, S, D)
    assert bool(jnp.all(jnp.isfinite(out)))
    max_diff = float(jnp.max(jnp.abs(out - ref)))
    assert bool(jnp.allclose(out, ref, atol=1e-2, rtol=1e-2)), f"max abs diff {max_diff}"

    print("KERNEL_OK")
</pallas_src>

<mosaic_0001>
module attributes {stable_mosaic.version = 11 : i64} {
  func.func @mha_kernel(%arg0: memref<16x32xf32, #tpu.memory_space<vmem>>, %arg1: memref<16x32xf32, #tpu.memory_space<vmem>>, %arg2: memref<16x32xf32, #tpu.memory_space<vmem>>, %arg3: memref<32x32xf32, #tpu.memory_space<vmem>>, %arg4: memref<1x32xf32, #tpu.memory_space<vmem>>, %arg5: memref<32x32xf32, #tpu.memory_space<vmem>>, %arg6: memref<1x32xf32, #tpu.memory_space<vmem>>, %arg7: memref<32x32xf32, #tpu.memory_space<vmem>>, %arg8: memref<1x32xf32, #tpu.memory_space<vmem>>, %arg9: memref<32x32xf32, #tpu.memory_space<vmem>>, %arg10: memref<1x32xf32, #tpu.memory_space<vmem>>, %arg11: memref<16x32xf32, #tpu.memory_space<vmem>>, %arg12: memref<2x8x32xf32, #tpu.memory_space<vmem>>) attributes {dimension_semantics = [], scalar_prefetch = 0 : i64, scratch_operands = 1 : i64, tpu.core_type = #tpu.core_type<tc>} {
    %c0 = arith.constant 0 : index
    %c0_0 = arith.constant 0 : index
    %0 = vector.load %arg0[%c0, %c0_0] : memref<16x32xf32, #tpu.memory_space<vmem>>, vector<16x32xf32>
    %c0_1 = arith.constant 0 : index
    %c0_2 = arith.constant 0 : index
    %1 = vector.load %arg3[%c0_1, %c0_2] : memref<32x32xf32, #tpu.memory_space<vmem>>, vector<32x32xf32>
    %cst = arith.constant dense<0.000000e+00> : vector<16x32xf32>
    %2 = tpu.matmul %0, %1, %cst {dimension_numbers = #tpu.dot_dimension_numbers<[1], [0], [0], [1], [0, 0, 1, 1], [], []>} : vector<16x32xf32>, vector<32x32xf32>, vector<16x32xf32> -> vector<16x32xf32>
    %c0_3 = arith.constant 0 : index
    %c0_4 = arith.constant 0 : index
    %3 = vector.load %arg4[%c0_3, %c0_4] : memref<1x32xf32, #tpu.memory_space<vmem>>, vector<1x32xf32>
    %4 = vector.broadcast %3 : vector<1x32xf32> to vector<16x32xf32>
    %5 = arith.addf %2, %4 : vector<16x32xf32>
    %c0_5 = arith.constant 0 : index
    %c0_6 = arith.constant 0 : index
    %6 = vector.load %arg1[%c0_5, %c0_6] : memref<16x32xf32, #tpu.memory_space<vmem>>, vector<16x32xf32>
    %c0_7 = arith.constant 0 : index
    %c0_8 = arith.constant 0 : index
    %7 = vector.load %arg5[%c0_7, %c0_8] : memref<32x32xf32, #tpu.memory_space<vmem>>, vector<32x32xf32>
    %cst_9 = arith.constant dense<0.000000e+00> : vector<16x32xf32>
    %8 = tpu.matmul %6, %7, %cst_9 {dimension_numbers = #tpu.dot_dimension_numbers<[1], [0], [0], [1], [0, 0, 1, 1], [], []>} : vector<16x32xf32>, vector<32x32xf32>, vector<16x32xf32> -> vector<16x32xf32>
    %c0_10 = arith.constant 0 : index
    %c0_11 = arith.constant 0 : index
    %9 = vector.load %arg6[%c0_10, %c0_11] : memref<1x32xf32, #tpu.memory_space<vmem>>, vector<1x32xf32>
    %10 = vector.broadcast %9 : vector<1x32xf32> to vector<16x32xf32>
    %11 = arith.addf %8, %10 : vector<16x32xf32>
    %c0_12 = arith.constant 0 : index
    %c0_13 = arith.constant 0 : index
    %12 = vector.load %arg2[%c0_12, %c0_13] : memref<16x32xf32, #tpu.memory_space<vmem>>, vector<16x32xf32>
    %c0_14 = arith.constant 0 : index
    %c0_15 = arith.constant 0 : index
    %13 = vector.load %arg7[%c0_14, %c0_15] : memref<32x32xf32, #tpu.memory_space<vmem>>, vector<32x32xf32>
    %cst_16 = arith.constant dense<0.000000e+00> : vector<16x32xf32>
    %14 = tpu.matmul %12, %13, %cst_16 {dimension_numbers = #tpu.dot_dimension_numbers<[1], [0], [0], [1], [0, 0, 1, 1], [], []>} : vector<16x32xf32>, vector<32x32xf32>, vector<16x32xf32> -> vector<16x32xf32>
    %c0_17 = arith.constant 0 : index
    %c0_18 = arith.constant 0 : index
    %15 = vector.load %arg8[%c0_17, %c0_18] : memref<1x32xf32, #tpu.memory_space<vmem>>, vector<1x32xf32>
    %16 = vector.broadcast %15 : vector<1x32xf32> to vector<16x32xf32>
    %17 = arith.addf %14, %16 : vector<16x32xf32>
    %cst_19 = arith.constant 0.353553385 : f32
    %18 = vector.broadcast %cst_19 : f32 to vector<16x32xf32>
    %19 = arith.mulf %5, %18 : vector<16x32xf32>
    %20 = vector.shape_cast %19 : vector<16x32xf32> to vector<2x8x32xf32>
    %21 = vector.shape_cast %11 : vector<16x32xf32> to vector<2x8x32xf32>
    %22 = vector.shape_cast %17 : vector<16x32xf32> to vector<2x8x32xf32>
    %23 = vector.extract_strided_slice %20 {offsets = [0, 0, 0], sizes = [2, 8, 8], strides = [1, 1, 1]} : vector<2x8x32xf32> to vector<2x8x8xf32>
    %24 = vector.extract_strided_slice %21 {offsets = [0, 0, 0], sizes = [2, 8, 8], strides = [1, 1, 1]} : vector<2x8x32xf32> to vector<2x8x8xf32>
    %25 = vector.extract_strided_slice %22 {offsets = [0, 0, 0], sizes = [2, 8, 8], strides = [1, 1, 1]} : vector<2x8x32xf32> to vector<2x8x8xf32>
    "tpu.trace_start"() <{level = 10 : i32, message = "bqd,bkd->bqk"}> : () -> ()
    %cst_20 = arith.constant dense<0.000000e+00> : vector<2x8x8xf32>
    %26 = tpu.matmul %23, %24, %cst_20 {dimension_numbers = #tpu.dot_dimension_numbers<[2], [2], [1], [1], [0, 0, 0, 1, 1, 1], [0], [0]>} : vector<2x8x8xf32>, vector<2x8x8xf32>, vector<2x8x8xf32> -> vector<2x8x8xf32>
    "tpu.trace_stop"() : () -> ()
    %cst_21 = arith.constant dense<0xFF800000> : vector<2x8xf32>
    %27 = vector.multi_reduction <maximumf>, %26, %cst_21 [2] : vector<2x8x8xf32> to vector<2x8xf32>
    %28 = vector.shape_cast %27 : vector<2x8xf32> to vector<2x8x1xf32>
    %29 = vector.broadcast %28 : vector<2x8x1xf32> to vector<2x8x8xf32>
    %30 = arith.subf %26, %29 : vector<2x8x8xf32>
    %31 = math.exp %30 : vector<2x8x8xf32>
    %cst_22 = arith.constant dense<0.000000e+00> : vector<2x8xf32>
    %32 = vector.multi_reduction <add>, %31, %cst_22 [2] : vector<2x8x8xf32> to vector<2x8xf32>
    %33 = vector.shape_cast %32 : vector<2x8xf32> to vector<2x8x1xf32>
    %34 = tpu.reciprocal %33 {approx = true} : vector<2x8x1xf32> -> vector<2x8x1xf32>
    %35 = vector.broadcast %34 : vector<2x8x1xf32> to vector<2x8x8xf32>
    %36 = arith.mulf %31, %35 : vector<2x8x8xf32>
    "tpu.trace_start"() <{level = 10 : i32, message = "bqk,bkd->bqd"}> : () -> ()
    %cst_23 = arith.constant dense<0.000000e+00> : vector<2x8x8xf32>
    %37 = tpu.matmul %36, %25, %cst_23 {dimension_numbers = #tpu.dot_dimension_numbers<[2], [1], [1], [2], [0, 0, 0, 1, 1, 2], [0], [0]>} : vector<2x8x8xf32>, vector<2x8x8xf32>, vector<2x8x8xf32> -> vector<2x8x8xf32>
    "tpu.trace_stop"() : () -> ()
    %c0_24 = arith.constant 0 : index
    %c0_25 = arith.constant 0 : index
    %c0_26 = arith.constant 0 : index
    %38 = vector.load %arg12[%c0_24, %c0_25, %c0_26] : memref<2x8x32xf32, #tpu.memory_space<vmem>>, vector<2x8x8xf32>
    tpu.vector_store %arg12[%c0_24, %c0_25, %c0_26], %37 {strides = array<i32>} : memref<2x8x32xf32, #tpu.memory_space<vmem>>, vector<2x8x8xf32>,
    %39 = vector.extract_strided_slice %20 {offsets = [0, 0, 8], sizes = [2, 8, 8], strides = [1, 1, 1]} : vector<2x8x32xf32> to vector<2x8x8xf32>
    %40 = vector.extract_strided_slice %21 {offsets = [0, 0, 8], sizes = [2, 8, 8], strides = [1, 1, 1]} : vector<2x8x32xf32> to vector<2x8x8xf32>
    %41 = vector.extract_strided_slice %22 {offsets = [0, 0, 8], sizes = [2, 8, 8], strides = [1, 1, 1]} : vector<2x8x32xf32> to vector<2x8x8xf32>
    "tpu.trace_start"() <{level = 10 : i32, message = "bqd,bkd->bqk"}> : () -> ()
    %cst_27 = arith.constant dense<0.000000e+00> : vector<2x8x8xf32>
    %42 = tpu.matmul %39, %40, %cst_27 {dimension_numbers = #tpu.dot_dimension_numbers<[2], [2], [1], [1], [0, 0, 0, 1, 1, 1], [0], [0]>} : vector<2x8x8xf32>, vector<2x8x8xf32>, vector<2x8x8xf32> -> vector<2x8x8xf32>
    "tpu.trace_stop"() : () -> ()
    %cst_28 = arith.constant dense<0xFF800000> : vector<2x8xf32>
    %43 = vector.multi_reduction <maximumf>, %42, %cst_28 [2] : vector<2x8x8xf32> to vector<2x8xf32>
    %44 = vector.shape_cast %43 : vector<2x8xf32> to vector<2x8x1xf32>
    %45 = vector.broadcast %44 : vector<2x8x1xf32> to vector<2x8x8xf32>
    %46 = arith.subf %42, %45 : vector<2x8x8xf32>
    %47 = math.exp %46 : vector<2x8x8xf32>
    %cst_29 = arith.constant dense<0.000000e+00> : vector<2x8xf32>
    %48 = vector.multi_reduction <add>, %47, %cst_29 [2] : vector<2x8x8xf32> to vector<2x8xf32>
    %49 = vector.shape_cast %48 : vector<2x8xf32> to vector<2x8x1xf32>
    %50 = tpu.reciprocal %49 {approx = true} : vector<2x8x1xf32> -> vector<2x8x1xf32>
    %51 = vector.broadcast %50 : vector<2x8x1xf32> to vector<2x8x8xf32>
    %52 = arith.mulf %47, %51 : vector<2x8x8xf32>
    "tpu.trace_start"() <{level = 10 : i32, message = "bqk,bkd->bqd"}> : () -> ()
    %cst_30 = arith.constant dense<0.000000e+00> : vector<2x8x8xf32>
    %53 = tpu.matmul %52, %41, %cst_30 {dimension_numbers = #tpu.dot_dimension_numbers<[2], [1], [1], [2], [0, 0, 0, 1, 1, 2], [0], [0]>} : vector<2x8x8xf32>, vector<2x8x8xf32>, vector<2x8x8xf32> -> vector<2x8x8xf32>
    "tpu.trace_stop"() : () -> ()
    %c0_31 = arith.constant 0 : index
    %c0_32 = arith.constant 0 : index
    %c8 = arith.constant 8 : index
    %54 = vector.load %arg12[%c0_31, %c0_32, %c8] : memref<2x8x32xf32, #tpu.memory_space<vmem>>, vector<2x8x8xf32>
    tpu.vector_store %arg12[%c0_31, %c0_32, %c8], %53 {strides = array<i32>} : memref<2x8x32xf32, #tpu.memory_space<vmem>>, vector<2x8x8xf32>,
    %55 = vector.extract_strided_slice %20 {offsets = [0, 0, 16], sizes = [2, 8, 8], strides = [1, 1, 1]} : vector<2x8x32xf32> to vector<2x8x8xf32>
    %56 = vector.extract_strided_slice %21 {offsets = [0, 0, 16], sizes = [2, 8, 8], strides = [1, 1, 1]} : vector<2x8x32xf32> to vector<2x8x8xf32>
    %57 = vector.extract_strided_slice %22 {offsets = [0, 0, 16], sizes = [2, 8, 8], strides = [1, 1, 1]} : vector<2x8x32xf32> to vector<2x8x8xf32>
    "tpu.trace_start"() <{level = 10 : i32, message = "bqd,bkd->bqk"}> : () -> ()
    %cst_33 = arith.constant dense<0.000000e+00> : vector<2x8x8xf32>
    %58 = tpu.matmul %55, %56, %cst_33 {dimension_numbers = #tpu.dot_dimension_numbers<[2], [2], [1], [1], [0, 0, 0, 1, 1, 1], [0], [0]>} : vector<2x8x8xf32>, vector<2x8x8xf32>, vector<2x8x8xf32> -> vector<2x8x8xf32>
    "tpu.trace_stop"() : () -> ()
    %cst_34 = arith.constant dense<0xFF800000> : vector<2x8xf32>
    %59 = vector.multi_reduction <maximumf>, %58, %cst_34 [2] : vector<2x8x8xf32> to vector<2x8xf32>
    %60 = vector.shape_cast %59 : vector<2x8xf32> to vector<2x8x1xf32>
    %61 = vector.broadcast %60 : vector<2x8x1xf32> to vector<2x8x8xf32>
    %62 = arith.subf %58, %61 : vector<2x8x8xf32>
    %63 = math.exp %62 : vector<2x8x8xf32>
    %cst_35 = arith.constant dense<0.000000e+00> : vector<2x8xf32>
    %64 = vector.multi_reduction <add>, %63, %cst_35 [2] : vector<2x8x8xf32> to vector<2x8xf32>
    %65 = vector.shape_cast %64 : vector<2x8xf32> to vector<2x8x1xf32>
    %66 = tpu.reciprocal %65 {approx = true} : vector<2x8x1xf32> -> vector<2x8x1xf32>
    %67 = vector.broadcast %66 : vector<2x8x1xf32> to vector<2x8x8xf32>
    %68 = arith.mulf %63, %67 : vector<2x8x8xf32>
    "tpu.trace_start"() <{level = 10 : i32, message = "bqk,bkd->bqd"}> : () -> ()
    %cst_36 = arith.constant dense<0.000000e+00> : vector<2x8x8xf32>
    %69 = tpu.matmul %68, %57, %cst_36 {dimension_numbers = #tpu.dot_dimension_numbers<[2], [1], [1], [2], [0, 0, 0, 1, 1, 2], [0], [0]>} : vector<2x8x8xf32>, vector<2x8x8xf32>, vector<2x8x8xf32> -> vector<2x8x8xf32>
    "tpu.trace_stop"() : () -> ()
    %c0_37 = arith.constant 0 : index
    %c0_38 = arith.constant 0 : index
    %c16 = arith.constant 16 : index
    %70 = vector.load %arg12[%c0_37, %c0_38, %c16] : memref<2x8x32xf32, #tpu.memory_space<vmem>>, vector<2x8x8xf32>
    tpu.vector_store %arg12[%c0_37, %c0_38, %c16], %69 {strides = array<i32>} : memref<2x8x32xf32, #tpu.memory_space<vmem>>, vector<2x8x8xf32>,
    %71 = vector.extract_strided_slice %20 {offsets = [0, 0, 24], sizes = [2, 8, 8], strides = [1, 1, 1]} : vector<2x8x32xf32> to vector<2x8x8xf32>
    %72 = vector.extract_strided_slice %21 {offsets = [0, 0, 24], sizes = [2, 8, 8], strides = [1, 1, 1]} : vector<2x8x32xf32> to vector<2x8x8xf32>
    %73 = vector.extract_strided_slice %22 {offsets = [0, 0, 24], sizes = [2, 8, 8], strides = [1, 1, 1]} : vector<2x8x32xf32> to vector<2x8x8xf32>
    "tpu.trace_start"() <{level = 10 : i32, message = "bqd,bkd->bqk"}> : () -> ()
    %cst_39 = arith.constant dense<0.000000e+00> : vector<2x8x8xf32>
    %74 = tpu.matmul %71, %72, %cst_39 {dimension_numbers = #tpu.dot_dimension_numbers<[2], [2], [1], [1], [0, 0, 0, 1, 1, 1], [0], [0]>} : vector<2x8x8xf32>, vector<2x8x8xf32>, vector<2x8x8xf32> -> vector<2x8x8xf32>
    "tpu.trace_stop"() : () -> ()
    %cst_40 = arith.constant dense<0xFF800000> : vector<2x8xf32>
    %75 = vector.multi_reduction <maximumf>, %74, %cst_40 [2] : vector<2x8x8xf32> to vector<2x8xf32>
    %76 = vector.shape_cast %75 : vector<2x8xf32> to vector<2x8x1xf32>
    %77 = vector.broadcast %76 : vector<2x8x1xf32> to vector<2x8x8xf32>
    %78 = arith.subf %74, %77 : vector<2x8x8xf32>
    %79 = math.exp %78 : vector<2x8x8xf32>
    %cst_41 = arith.constant dense<0.000000e+00> : vector<2x8xf32>
    %80 = vector.multi_reduction <add>, %79, %cst_41 [2] : vector<2x8x8xf32> to vector<2x8xf32>
    %81 = vector.shape_cast %80 : vector<2x8xf32> to vector<2x8x1xf32>
    %82 = tpu.reciprocal %81 {approx = true} : vector<2x8x1xf32> -> vector<2x8x1xf32>
    %83 = vector.broadcast %82 : vector<2x8x1xf32> to vector<2x8x8xf32>
    %84 = arith.mulf %79, %83 : vector<2x8x8xf32>
    "tpu.trace_start"() <{level = 10 : i32, message = "bqk,bkd->bqd"}> : () -> ()
    %cst_42 = arith.constant dense<0.000000e+00> : vector<2x8x8xf32>
    %85 = tpu.matmul %84, %73, %cst_42 {dimension_numbers = #tpu.dot_dimension_numbers<[2], [1], [1], [2], [0, 0, 0, 1, 1, 2], [0], [0]>} : vector<2x8x8xf32>, vector<2x8x8xf32>, vector<2x8x8xf32> -> vector<2x8x8xf32>
    "tpu.trace_stop"() : () -> ()
    %c0_43 = arith.constant 0 : index
    %c0_44 = arith.constant 0 : index
    %c24 = arith.constant 24 : index
    %86 = vector.load %arg12[%c0_43, %c0_44, %c24] : memref<2x8x32xf32, #tpu.memory_space<vmem>>, vector<2x8x8xf32>
    tpu.vector_store %arg12[%c0_43, %c0_44, %c24], %85 {strides = array<i32>} : memref<2x8x32xf32, #tpu.memory_space<vmem>>, vector<2x8x8xf32>,
    %c0_45 = arith.constant 0 : index
    %c0_46 = arith.constant 0 : index
    %c0_47 = arith.constant 0 : index
    %87 = vector.load %arg12[%c0_45, %c0_46, %c0_47] : memref<2x8x32xf32, #tpu.memory_space<vmem>>, vector<2x8x32xf32>
    %88 = vector.shape_cast %87 : vector<2x8x32xf32> to vector<16x32xf32>
    %c0_48 = arith.constant 0 : index
    %c0_49 = arith.constant 0 : index
    %89 = vector.load %arg9[%c0_48, %c0_49] : memref<32x32xf32, #tpu.memory_space<vmem>>, vector<32x32xf32>
    %cst_50 = arith.constant dense<0.000000e+00> : vector<16x32xf32>
    %90 = tpu.matmul %88, %89, %cst_50 {dimension_numbers = #tpu.dot_dimension_numbers<[1], [0], [0], [1], [0, 0, 1, 1], [], []>} : vector<16x32xf32>, vector<32x32xf32>, vector<16x32xf32> -> vector<16x32xf32>
    %c0_51 = arith.constant 0 : index
    %c0_52 = arith.constant 0 : index
    %91 = vector.load %arg10[%c0_51, %c0_52] : memref<1x32xf32, #tpu.memory_space<vmem>>, vector<1x32xf32>
    %92 = vector.broadcast %91 : vector<1x32xf32> to vector<16x32xf32>
    %93 = arith.addf %90, %92 : vector<16x32xf32>
    %c0_53 = arith.constant 0 : index
    %c0_54 = arith.constant 0 : index
    %94 = vector.load %arg11[%c0_53, %c0_54] : memref<16x32xf32, #tpu.memory_space<vmem>>, vector<16x32xf32>
    tpu.vector_store %arg11[%c0_53, %c0_54], %93 {strides = array<i32>} : memref<16x32xf32, #tpu.memory_space<vmem>>, vector<16x32xf32>,
    return
  }
}

</mosaic_0001>

<bundles_post_ra>
// kernel: tpu_custom_call.1
= control target key start
LH: loop header
LB: loop body
LE: loop exit
PB: predicated region body
PF: predicated region fallthrough
CT: control target
= control target key end

     0   :  { %16 = vsyncpa [#allocation4], 0  ;;  %s1397_s0 = inlined_call_operand.hbm [shape: f32[16,32], index: 0, kind: input, shape index: {}]   ;;  %s1398_s1 = inlined_call_operand.hbm [shape: f32[16,32], index: 1, kind: input, shape index: {}]   ;;  %s1399_s2 = inlined_call_operand.hbm [shape: f32[16,32], index: 2, kind: input, shape index: {}]   ;;  %s1400_s3 = inlined_call_operand.hbm [shape: f32[32,32], index: 3, kind: input, shape index: {}]   ;;  %s1401_s4 = inlined_call_operand.vmem [shape: f32[1,32], index: 4, kind: input, shape index: {}]   ;;  %s1402_s5 = inlined_call_operand.hbm [shape: f32[32,32], index: 5, kind: input, shape index: {}]   ;;  %s1403_s6 = inlined_call_operand.vmem [shape: f32[1,32], index: 6, kind: input, shape index: {}]   ;;  %s1404_s7 = inlined_call_operand.hbm [shape: f32[32,32], index: 7, kind: input, shape index: {}]   ;;  %s1405_s8 = inlined_call_operand.vmem [shape: f32[1,32], index: 8, kind: input, shape index: {}]   ;;  %s1406_s9 = inlined_call_operand.hbm [shape: f32[32,32], index: 9, kind: input, shape index: {}]   ;;  %s1407_s10 = inlined_call_operand.vmem [shape: f32[1,32], index: 10, kind: input, shape index: {}]   ;;  %s1408_s11 = inlined_call_operand.hbm [shape: f32[16,32], index: 11, kind: output, shape index: {}]  }
   0x1   :  { %17 = vsyncpa [#allocation7], 0 }
   0x2   :  { %18 = vsyncpa [#allocation10], 0 }
   0x3   :  { %19 = vsyncpa [#allocation13], 0 }
   0x4   :  { %20 = vsyncpa [#allocation5], 0  ;;  %s38_s19 = sshll.u32 %s1398_s1, 4  ;;  %s1173_s20 = smov [#allocation6]   ;;  %s39_s19 = int_to_ptr.hbm [resolvable:$true] %s38_s19 }
   0x5   :  { %s40_s21 = sshll.u32 %s1173_s20, 4  ;;  %s64_s24 = sshll.u32 %s1400_s3, 4  ;;  %s41_s21 = int_to_ptr.vmem [resolvable:$true] %s40_s21  ;;  %s65_s24 = int_to_ptr.hbm [resolvable:$true] %s64_s24 }
   0x6   :  { %s1174_s25 = smov 128   ;;  %s1175_s26 = smov 8  }
   0x7   :  { %46 = dma.hbm_to_vmem [thread:$0]  %s39_s19, 256, %s41_s21, [#allocation7], %s1174_s25, %s1174_s25, %s1175_s26  }
   0x8   :  { %s1176_s27 = smov [#allocation9]   ;;  %s94_s1 = sshll.u32 %s1404_s7, 4  ;;  %s95_s1 = int_to_ptr.hbm [resolvable:$true] %s94_s1 }
   0x9   :  { %s66_s28 = sshll.u32 %s1176_s27, 4  ;;  %s25_s13 = sshll.u32 %s1397_s0, 4  ;;  %s67_s28 = int_to_ptr.vmem [resolvable:$true] %s66_s28  ;;  %s26_s13 = int_to_ptr.hbm [resolvable:$true] %s25_s13 }
   0xa   :  { %72 = dma.hbm_to_vmem [thread:$0]  %s65_s24, 512, %s67_s28, [#allocation10], %s1174_s25, %s1174_s25, %s1175_s26  }
   0xb   :  { %s1177_s14 = smov [#allocation12]   ;;  %s1178_s16 = smov [#allocation3]  }
   0xc   :  { %s96_s15 = sshll.u32 %s1177_s14, 4  ;;  %s27_s7 = sshll.u32 %s1178_s16, 4  ;;  %s97_s15 = int_to_ptr.vmem [resolvable:$true] %s96_s15  ;;  %s28_s7 = int_to_ptr.vmem [resolvable:$true] %s27_s7 }
   0xd   :  { %102 = dma.hbm_to_vmem [thread:$0]  %s95_s1, 512, %s97_s15, [#allocation13], %s1174_s25, %s1174_s25, %s1175_s26  }
   0xe   :  { %s51_s19 = sshll.u32 %s1399_s2, 4  ;;  %s79_s21 = sshll.u32 %s1402_s5, 4  ;;  %s52_s19 = int_to_ptr.hbm [resolvable:$true] %s51_s19  ;;  %s80_s21 = int_to_ptr.hbm [resolvable:$true] %s79_s21 }
   0xf   :  { %33 = dma.hbm_to_vmem [thread:$0]  %s26_s13, 256, %s28_s7, [#allocation4], %s1174_s25, %s1174_s25, %s1175_s26  }
  0x10   :  { %s1179_s22 = smov [#allocation8]   ;;  %s1180_s24 = smov [#allocation11]  }
  0x11   :  { %s53_s23 = sshll.u32 %s1179_s22, 4  ;;  %s81_s2 = sshll.u32 %s1180_s24, 4  ;;  %s54_s23 = int_to_ptr.vmem [resolvable:$true] %s53_s23  ;;  %s82_s2 = int_to_ptr.vmem [resolvable:$true] %s81_s2 }
  0x12   :  { %59 = dma.hbm_to_vmem [thread:$0]  %s52_s19, 256, %s54_s23, [#allocation7], %s1174_s25, %s1174_s25, %s1175_s26  }
  0x13   :  { %s109_s29 = sshll.u32 %s1406_s9, 4  ;;  %s1181_s5 = smov [#allocation14]   ;;  %s110_s29 = int_to_ptr.hbm [resolvable:$true] %s109_s29 }
  0x14   :  { %87 = dma.hbm_to_vmem [thread:$0]  %s80_s21, 512, %s82_s2, [#allocation10], %s1174_s25, %s1174_s25, %s1175_s26  }
  0x15   :  { %s111_s30 = sshll.u32 %s1181_s5, 4  ;;  %s112_s30 = int_to_ptr.vmem [resolvable:$true] %s111_s30 }
  0x16   :  { %117 = dma.hbm_to_vmem [thread:$0]  %s110_s29, 512, %s112_s30, [#allocation13], %s1174_s25, %s1174_s25, %s1175_s26  }
  0x17   :  { %1163 = dma.done.wait [#allocation4], 256  }
  0x18   :  { %1164 = vsyncadd [#allocation4], 4294967040 }
  0x19   :  { %1165 = dma.done.wait [#allocation7], 512  }
  0x1a   :  { %1166 = vsyncadd [#allocation7], 4294966784 }
  0x1b   :  { %1167 = dma.done.wait [#allocation10], 1024  }
  0x1c   :  { %1168 = vsyncadd [#allocation10], 4294966272 }
  0x1d   :  { %1169 = dma.done.wait [#allocation13], 1024  }
  0x1e   :  { %1170 = vsyncadd [#allocation13], 4294966272  ;;  %v193_v0 = vld [vmem:[#allocation11 + $0x18] sm:$0xff]  ;;  %v192_v2 = vld [vmem:[#allocation11 + $0x10] sm:$0xff]  ;;  %vm158_vm0 = vcmask 261120   ;;  %vm268_vm1 = vcmask 64512  }
  0x1f   :  { %v153_v1 = vld [vmem:[#allocation9 + $0x18] sm:$0xff]  ;;  %216 = vmatpush.msra.mxu1 %v193_v0  ;;  %v152_v3 = vld [vmem:[#allocation9 + $0x10] sm:$0xff]  ;;  %911 = vmatpush.msra.mxu2 %v193_v0  ;;  %v191_v4 = vld [vmem:[#allocation11 + $0x8] sm:$0xff]  ;;  %s1182_s13 = smov 112   ;;  %s1183_s14 = smov 120   ;;  %vm531_vm2 = vcmask 130112  }
  0x20   :  { %177 = vmatpush.msra.mxu0 %v153_v1  ;;  %v151_v5 = vld [vmem:[#allocation9 + $0x8] sm:$0xff]  ;;  %v190_v6 = vld [vmem:[#allocation11] sm:$0xff]  ;;  %v148_v9 = vld [vmem:[#allocation3] sm:$0xff]  ;;  %s1186_s16 = smov 24   ;;  %vm672_vm3 = vcmask 195712   ;;  %vm813_vm4 = vcmask 261312  }
  0x21   :  { %217 = vmatpush.msra.mxu1 %v192_v2  ;;  %v150_v7 = vld [vmem:[#allocation9] sm:$0xff]  ;;  %912 = vmatpush.msra.mxu2 %v192_v2  ;;  %v189_v10 = vld [vmem:[#allocation6 + $0x8] sm:$0xff]  ;;  %v149_v11 = vld [vmem:[#allocation3 + $0x8] sm:$0xff]  ;;  %s1187_s18 = smov [#allocation15]   ;;  %s863_s21 = sshll.u32 %s1408_s11, 4  ;;  %s864_s21 = int_to_ptr.hbm [resolvable:$true] %s863_s21 }
  0x22   :  { %178 = vmatpush.msra.mxu0 %v152_v3  ;;  %v188_v8 = vld [vmem:[#allocation6] sm:$0xff]  ;;  %v232_v24 = vld [vmem:[#allocation12 + $0x18] sm:$0xff]  ;;  %v231_v25 = vld [vmem:[#allocation12 + $0x10] sm:$0xff]  ;;  %s861_s19 = sshll.u32 %s1187_s18, 4  ;;  %s862_s19 = int_to_ptr.vmem [resolvable:$true] %s861_s19 }
  0x23   :  { %218 = vmatpush.msra.mxu1 %v191_v4  ;;  %913 = vmatpush.msra.mxu2 %v191_v4  ;;  %v935_v12 = vld [vmem:[%s1403_s6] ss:$0 sm:$0xff]  ;;  %v230_v26 = vld [vmem:[#allocation12 + $0x8] sm:$0xff]  ;;  %v227_v28 = vld [vmem:[#allocation8] sm:$0xff] }
  0x24   :  { %179 = vmatpush.msra.mxu0 %v151_v5  ;;  %v936_v13 = vld [vmem:[%s1401_s4] ss:$0 sm:$0xff]  ;;  %s1184_s4 = smov 104   ;;  %v228_v29 = vld [vmem:[#allocation8 + $0x8] sm:$0xff] }
  0x25   :  { %219 = vmatpush.msra.mxu1 %v190_v6  ;;  %914 = vmatpush.msra.mxu2 %v190_v6  ;;  %v229_v27 = vld [vmem:[#allocation12] sm:$0xff] }
  0x26   :  { %180 = vmatpush.msra.mxu0 %v150_v7  ;;  %881 = vmatmul.msk.f32.vlgmr.msra.gmra.mxu1 %vm158_vm0, %v188_v8  ;;  %v937_v46 = vld [vmem:[%s1405_s8] ss:$0 sm:$0xff]  ;;  %s1185_s8 = smov 16  }
  0x27   :  { %879 = vmatmul.msk.f32.vlgmr.msra.gmra.mxu0 %vm158_vm0, %v148_v9  ;;  %882 = vmatmul.msk.f32.vlgmr.msra.gmra.mxu2 %vm158_vm0, %v189_v10 }
  0x28   :  { %255 = vmatpush.msrb.mxu2 %v232_v24 }
  0x2a   :  { %256 = vmatpush.msrb.mxu2 %v231_v25 }
  0x2c   :  { %257 = vmatpush.msrb.mxu2 %v230_v26 }
  0x2e   :  { %258 = vmatpush.msrb.mxu2 %v229_v27 }
  0x2f   :  { %880 = vmatmul.msk.f32.gmra.mxu0 %vm158_vm0, %v149_v11  ;;  %883 = vmatmul.msk.f32.vlgmr.msrb.gmra.mxu2 %vm158_vm0, %v227_v28 }
  0x37   :  { %884 = vmatmul.msk.f32.gmra.mxu2 %vm158_vm0, %v228_v29 }
  0xa3   :  { %v221_v14 = vpop.f32.mrf.mxu1 }
  0xa4   :  { %v182_v15 = vpop.f32.mrf.mxu0  ;;  %v222_v16 = vadd.f32 %v935_v12, %v221_v14 }
  0xa5   :  { %v183_v17 = vadd.f32 %v936_v13, %v182_v15 }
  0xa6   :  { %536 = vrot.lane.b32.xlu1 %v222_v16, %s1182_s13  ;;  %393 = vrot.lane.b32.xlu0 %v222_v16, %s1183_s14 }
  0xa7   :  { %v266_v18 = vmul.f32 0.35355338, %v183_v17  ;;  %885 = vmatpush.xpose.msk.msra.mxu3 %vm268_vm1, %v222_v16 }
  0xa9   :  { %534 = vrot.lane.b32.xlu2 %v266_v18, %s1182_s13 }
  0xaa   :  { %886 = vmatmul.msk.f32.vlgmr.msra.gmra.mxu3 %vm268_vm1, %v266_v18  ;;  %v224_v19 = vpop.f32.mrf.mxu2 }
  0xab   :  { %v225_v21 = vadd.f32 %v935_v12, %v224_v19 }
  0xac   :  { %v185_v20 = vpop.f32.mrf.mxu0 }
  0xad   :  { %v186_v22 = vadd.f32 %v936_v13, %v185_v20  ;;  %887 = vmatpush.xpose.msk.msrb.mxu3 %vm268_vm1, %v225_v21 }
  0xae   :  { %421 = vrot.lane.b32.xlu1 %v225_v21, %s1183_s14  ;;  %391 = vrot.lane.b32.xlu0 %v266_v18, %s1183_s14 }
  0xaf   :  { %v267_v23 = vmul.f32 0.35355338, %v186_v22 }
  0xb1   :  { %419 = vrot.lane.b32.xlu2 %v267_v23, %s1183_s14 }
  0xb2   :  { %888 = vmatmul.msk.f32.vlgmr.msrb.gmra.mxu3 %vm268_vm1, %v267_v23  ;;  %v260_v47 = vpop.f32.mrf.mxu2 }
  0xb3   :  { %v1335_v48 = vadd.f32 %v937_v46, %v260_v47 }
  0xb5   :  { %361 = vmatpush.msra.mxu3 %v1335_v48 }
  0xb6   :  { %677 = vrot.lane.b32.xlu1 %v222_v16, %s1184_s4  ;;  %564 = vrot.lane.b32.xlu0 %v225_v21, %s1182_s13 }
  0xb9   :  { %562 = vrot.lane.b32.xlu2 %v267_v23, %s1182_s13 }
  0xba   :  { %v263_v49 = vpop.f32.mrf.mxu2 }
  0xbb   :  { %v1338_v50 = vadd.f32 %v937_v46, %v263_v49 }
  0xbd   :  { %384 = vmatpush.msrb.mxu0 %v1338_v50 }
  0xbe   :  { %705 = vrot.lane.b32.xlu1 %v225_v21, %s1184_s4  ;;  %675 = vrot.lane.b32.xlu0 %v266_v18, %s1184_s4 }
  0xc1   :  { %703 = vrot.lane.b32.xlu2 %v267_v23, %s1184_s4 }
 0x103   :  { %v535_v30 = vpop.permute.xlu2 %534 }
 0x10b   :  { %v420_v33 = vpop.permute.xlu2 %419 }
 0x113   :  { %v563_v38 = vpop.permute.xlu2 %562 }
 0x118   :  { %v537_v31 = vpop.permute.xlu1 %536  ;;  %v394_v32 = vpop.permute.xlu0 %393 }
 0x119   :  { %891 = vmatpush.xpose.msk.msrb.mxu1 %vm268_vm1, %v394_v32 }
 0x11b   :  { %v704_v43 = vpop.permute.xlu2 %703 }
 0x11d   :  { %897 = vmatpush.xpose.msk.msra.mxu1 %vm268_vm1, %v537_v31 }
 0x120   :  { %v422_v34 = vpop.permute.xlu1 %421  ;;  %v392_v35 = vpop.permute.xlu0 %391 }
 0x121   :  { %893 = vmatpush.xpose.msk.msra.mxu2 %vm268_vm1, %v422_v34  ;;  %892 = vmatmul.msk.f32.vlgmr.msrb.gmra.mxu1 %vm268_vm1, %v392_v35 }
 0x124   :  { %894 = vmatmul.msk.f32.vlgmr.msra.gmra.mxu2 %vm268_vm1, %v420_v33 }
 0x128   :  { %v678_v36 = vpop.permute.xlu1 %677  ;;  %v565_v37 = vpop.permute.xlu0 %564 }
 0x129   :  { %903 = vmatpush.xpose.msk.msrb.mxu1 %vm268_vm1, %v678_v36  ;;  %899 = vmatpush.xpose.msk.msrb.mxu2 %vm268_vm1, %v565_v37 }
 0x12a   :  { %898 = vmatmul.msk.f32.vlgmr.msra.gmra.mxu1 %vm268_vm1, %v535_v30 }
 0x12c   :  { %900 = vmatmul.msk.f32.vlgmr.msrb.gmra.mxu2 %vm268_vm1, %v563_v38 }
 0x12d   :  { %v292_v39 = vpop.f32.mrf.mxu3 }
 0x12e   :  { %v321_v40 = vsel %vm268_vm1, %v292_v39, -inf }
 0x12f   :  { %322 = vmax.xlane.f32.xlu0 %v321_v40 }
 0x130   :  { %v706_v41 = vpop.permute.xlu1 %705  ;;  %v676_v42 = vpop.permute.xlu0 %675 }
 0x131   :  { %905 = vmatpush.xpose.msk.msra.mxu2 %vm268_vm1, %v706_v41 }
 0x132   :  { %904 = vmatmul.msk.f32.vlgmr.msrb.gmra.mxu1 %vm268_vm1, %v676_v42 }
 0x134   :  { %906 = vmatmul.msk.f32.vlgmr.msra.gmra.mxu2 %vm268_vm1, %v704_v43 }
 0x135   :  { %v318_v44 = vpop.f32.mrf.mxu3 }
 0x136   :  { %v324_v45 = vsel %vm268_vm1, %v318_v44, -inf }
 0x137   :  { %325 = vmax.xlane.f32.xlu2 %v324_v45 }
 0x19e   :  { %v416_v51 = vpop.f32.mrf.mxu1 }
 0x19f   :  { %v447_v52 = vsel %vm268_vm1, %v416_v51, -inf }
 0x1a0   :  { %448 = vmax.xlane.f32.xlu1 %v447_v52 }
 0x1a2   :  { %v323_v53 = vpop.xlane.xlu0 %322 }
 0x1a3   :  { %v327_v54 = vsub.f32 %v292_v39, %v323_v53  ;;  %v930_v39 = vpack.i.bf16 %v1338_v50, %v1335_v48 }
 0x1a5   :  { %v329_v59 = vmul.f32 1.442695, %v327_v54 }
 0x1a7   :  { %v559_v55 = vpop.f32.mrf.mxu1  ;;  %v444_v56 = vpop.f32.mrf.mxu2  ;;  %939 = vpow2.f32 %v329_v59 }
 0x1a8   :  { %v590_v57 = vsel %vm268_vm1, %v559_v55, -inf  ;;  %v450_v58 = vsel %vm268_vm1, %v444_v56, -inf }
 0x1a9   :  { %591 = vmax.xlane.f32.xlu2 %v590_v57  ;;  %451 = vmax.xlane.f32.xlu0 %v450_v58 }
 0x1aa   :  { %v326_v60 = vpop.xlane.xlu2 %325 }
 0x1ab   :  { %v328_v61 = vsub.f32 %v318_v44, %v326_v60 }
 0x1ad   :  { %v331_v62 = vmul.f32 1.442695, %v328_v61  ;;  %v940_v3 = vpop.eup %939 }
 0x1ae   :  { %v333_v6 = vsel %vm268_vm1, %v940_v3, 0.0 }
 0x1af   :  { %941 = vpow2.f32 %v331_v62  ;;  %v700_v63 = vpop.f32.mrf.mxu1  ;;  %v587_v0 = vpop.f32.mrf.mxu2 }
 0x1b0   :  { %v731_v1 = vsel %vm268_vm1, %v700_v63, -inf  ;;  %v593_v2 = vsel %vm268_vm1, %v587_v0, -inf }
 0x1b1   :  { %732 = vmax.xlane.f32.xlu1 %v731_v1  ;;  %594 = vmax.xlane.f32.xlu2 %v593_v2 }
 0x1b5   :  { %v942_v4 = vpop.eup %941 }
 0x1b6   :  { %v336_v5 = vsel %vm268_vm1, %v942_v4, 0.0 }
 0x1b7   :  { %337 = vadd.xlane.f32.xlu0 %v336_v5  ;;  %v728_v7 = vpop.f32.mrf.mxu2 }
 0x1b8   :  { %v734_v8 = vsel %vm268_vm1, %v728_v7, -inf }
 0x1b9   :  { %334 = vadd.xlane.f32.xlu1 %v333_v6 }
 0x1bf   :  { %735 = vmax.xlane.f32.xlu0 %v734_v8 }
 0x1d3   :  { %612 = vrot.lane.b32.xlu0 %v1335_v48, %s1182_s13 }
 0x213   :  { %v449_v9 = vpop.xlane.xlu1 %448 }
 0x214   :  { %v453_v10 = vsub.f32 %v416_v51, %v449_v9 }
 0x216   :  { %v455_v11 = vmul.f32 1.442695, %v453_v10 }
 0x218   :  { %943 = vpow2.f32 %v455_v11 }
 0x21c   :  { %v592_v12 = vpop.xlane.xlu2 %591  ;;  %v452_v13 = vpop.xlane.xlu0 %451 }
 0x21d   :  { %v596_v14 = vsub.f32 %v559_v55, %v592_v12  ;;  %v454_v15 = vsub.f32 %v444_v56, %v452_v13 }
 0x21e   :  { %v944_v16 = vpop.eup %943 }
 0x21f   :  { %v598_v17 = vmul.f32 1.442695, %v596_v14  ;;  %v457_v18 = vmul.f32 1.442695, %v454_v15  ;;  %v459_v19 = vsel %vm268_vm1, %v944_v16, 0.0 }
 0x220   :  { %460 = vadd.xlane.f32.xlu2 %v459_v19  ;;  %v819_v19 = vld [vmem:[#allocation14 + $0x8] sm:$0xff] }
 0x221   :  { %945 = vpow2.f32 %v598_v17  ;;  %v820_v17 = vld [vmem:[#allocation14 + $0x10] sm:$0xff] }
 0x222   :  { %947 = vpow2.f32 %v457_v18 }
 0x224   :  { %v733_v20 = vpop.xlane.xlu1 %732  ;;  %v595_v22 = vpop.xlane.xlu2 %594 }
 0x225   :  { %v737_v21 = vsub.f32 %v700_v63, %v733_v20  ;;  %v597_v25 = vsub.f32 %v587_v0, %v595_v22  ;;  %v818_v20 = vld [vmem:[#allocation14] sm:$0xff] }
 0x227   :  { %v946_v23 = vpop.eup %945  ;;  %v739_v24 = vmul.f32 1.442695, %v737_v21  ;;  %v600_v30 = vmul.f32 1.442695, %v597_v25 }
 0x228   :  { %v948_v26 = vpop.eup %947  ;;  %v602_v27 = vsel %vm268_vm1, %v946_v23, 0.0 }
 0x229   :  { %949 = vpow2.f32 %v739_v24  ;;  %603 = vadd.xlane.f32.xlu1 %v602_v27  ;;  %v462_v28 = vsel %vm268_vm1, %v948_v26, 0.0  ;;  %v938_v27 = vld [vmem:[%s1407_s10] ss:$0 sm:$0xff] }
 0x22a   :  { %463 = vadd.xlane.f32.xlu0 %v462_v28  ;;  %v338_v29 = vpop.xlane.xlu0 %337 }
 0x22b   :  { %951 = vrcp.f32 %v338_v29 }
 0x22c   :  { %v335_v31 = vpop.xlane.xlu1 %334 }
 0x22d   :  { %953 = vrcp.f32 %v335_v31 }
 0x22e   :  { %955 = vpow2.f32 %v600_v30 }
 0x22f   :  { %v1354_v32 = vpop.eup %949 }
 0x230   :  { %v743_v33 = vsel %vm268_vm1, %v1354_v32, 0.0 }
 0x231   :  { %v952_v34 = vpop.eup %951  ;;  %744 = vadd.xlane.f32.xlu1 %v743_v33 }
 0x232   :  { %v342_v35 = vmul.f32 %v952_v34, %v942_v4  ;;  %v736_v41 = vpop.xlane.xlu0 %735 }
 0x233   :  { %v954_v36 = vpop.eup %953  ;;  %v738_v42 = vsub.f32 %v728_v7, %v736_v41 }
 0x234   :  { %v341_v37 = vmul.f32 %v954_v36, %v940_v3  ;;  %890 = vmatmul.msk.f32.vlgmr.msrb.gmra.mxu0 %vm268_vm1, %v342_v35  ;;  %v956_v38 = vpop.eup %955 }
 0x235   :  { %v605_v40 = vsel %vm268_vm1, %v956_v38, 0.0  ;;  %v741_v43 = vmul.f32 1.442695, %v738_v42 }
 0x236   :  { %889 = vmatmul.msk.f32.vlgmr.msra.gmra.mxu3 %vm268_vm1, %v341_v37 }
 0x237   :  { %957 = vpow2.f32 %v741_v43 }
 0x238   :  { %931 = vrot.lane.b32.xlu2 %v930_v39, %s1183_s14 }
 0x239   :  { %606 = vadd.xlane.f32.xlu1 %v605_v40 }
 0x23d   :  { %v958_v44 = vpop.eup %957 }
 0x23e   :  { %638 = vrot.lane.b32.xlu0 %v1338_v50, %s1182_s13  ;;  %v746_v45 = vsel %vm268_vm1, %v958_v44, 0.0 }
 0x245   :  { %v613_v47 = vpop.permute.xlu0 %612 }
 0x246   :  { %779 = vrot.lane.b32.xlu0 %v1338_v50, %s1184_s4 }
 0x252   :  { %753 = vrot.lane.b32.xlu1 %v1335_v48, %s1184_s4 }
 0x261   :  { %747 = vadd.xlane.f32.xlu2 %v746_v45 }
 0x293   :  { %v461_v46 = vpop.xlane.xlu2 %460 }
 0x294   :  { %959 = vrcp.f32 %v461_v46 }
 0x29a   :  { %v960_v49 = vpop.eup %959 }
 0x29b   :  { %v932_v52 = vpop.permute.xlu2 %931  ;;  %v467_v55 = vmul.f32 %v960_v49, %v944_v16  ;;  %v821_v16 = vld [vmem:[#allocation14 + $0x18] sm:$0xff] }
 0x29c   :  { %v604_v51 = vpop.xlane.xlu1 %603  ;;  %v934_v53 = vunpack.i.h.bf16 %v932_v52  ;;  %v933_v50 = vunpack.i.l.bf16 %v932_v52  ;;  %844 = vmatpush.msra.mxu1 %v821_v16 }
 0x29d   :  { %961 = vrcp.f32 %v604_v51  ;;  %v464_v54 = vpop.xlane.xlu0 %463 }
 0x29e   :  { %963 = vrcp.f32 %v464_v54  ;;  %491 = vmatpush.msrb.mxu3 %v933_v50  ;;  %518 = vmatpush.msra.mxu0 %v934_v53 }
 0x29f   :  { %895 = vmatmul.msk.f32.vlgmr.msrb.gmra.mxu3 %vm268_vm1, %v467_v55  ;;  %845 = vmatpush.msra.mxu1 %v820_v17 }
 0x2a0   :  { %633 = vmatpush.msra.mxu3 %v613_v47 }
 0x2a1   :  { %846 = vmatpush.msra.mxu1 %v819_v19 }
 0x2a3   :  { %v962_v48 = vpop.eup %961  ;;  %847 = vmatpush.msra.mxu1 %v818_v20 }
 0x2a4   :  { %v964_v56 = vpop.eup %963  ;;  %v745_v57 = vpop.xlane.xlu1 %744  ;;  %v610_v59 = vmul.f32 %v962_v48, %v946_v23 }
 0x2a5   :  { %v468_v58 = vmul.f32 %v964_v56, %v948_v26 }
 0x2a7   :  { %896 = vmatmul.msk.f32.vlgmr.msra.gmra.mxu0 %vm268_vm1, %v468_v58  ;;  %901 = vmatmul.msk.f32.vlgmr.msra.gmra.mxu3 %vm268_vm1, %v610_v59 }
 0x2ac   :  { %v607_v60 = vpop.xlane.xlu1 %606 }
 0x2ad   :  { %965 = vrcp.f32 %v607_v60 }
 0x2ae   :  { %967 = vrcp.f32 %v745_v57 }
 0x2b0   :  { %v639_v61 = vpop.permute.xlu0 %638 }
 0x2b1   :  { %v386_v62 = vpop.f32.mrf.mxu0  ;;  %659 = vmatpush.msrb.mxu0 %v639_v61 }
 0x2b2   :  { %390 = vst.msk [vmem:[#allocation2 + $0x8] sm:$0xff] %vm268_vm1, %v386_v62 }
 0x2b3   :  { %v966_v63 = vpop.eup %965 }
 0x2b4   :  { %v611_v0 = vmul.f32 %v966_v63, %v956_v38  ;;  %v968_v3 = vpop.eup %967 }
 0x2b5   :  { %v751_v4 = vmul.f32 %v968_v3, %v1354_v32 }
 0x2b6   :  { %902 = vmatmul.msk.f32.vlgmr.msrb.gmra.mxu0 %vm268_vm1, %v611_v0 }
 0x2b8   :  { %v780_v1 = vpop.permute.xlu0 %779 }
 0x2b9   :  { %v363_v2 = vpop.f32.mrf.mxu3  ;;  %800 = vmatpush.msra.mxu0 %v780_v1 }
 0x2ba   :  { %389 = vst.msk [vmem:[#allocation2] sm:$0xff] %vm268_vm1, %v363_v2 }
 0x2c4   :  { %v754_v5 = vpop.permute.xlu1 %753 }
 0x2c5   :  { %774 = vmatpush.msrb.mxu3 %v754_v5 }
 0x2c6   :  { %907 = vmatmul.msk.f32.vlgmr.msrb.gmra.mxu3 %vm268_vm1, %v751_v4 }
 0x2d4   :  { %v748_v6 = vpop.xlane.xlu2 %747 }
 0x2d5   :  { %969 = vrcp.f32 %v748_v6 }
 0x2db   :  { %v970_v7 = vpop.eup %969 }
 0x2dc   :  { %v752_v8 = vmul.f32 %v970_v7, %v958_v44 }
 0x2de   :  { %908 = vmatmul.msk.f32.vlgmr.msra.gmra.mxu0 %vm268_vm1, %v752_v8 }
 0x322   :  { %v493_v9 = vpop.f32.mrf.mxu3 }
 0x323   :  { %525 = vrot.lane.b32.xlu1 %v493_v9, %s1175_s26 }
 0x324   :  { %v520_v11 = vpop.f32.mrf.mxu0 }
 0x32a   :  { %v635_v10 = vpop.f32.mrf.mxu3 }
 0x32b   :  { %666 = vrot.lane.b32.xlu0 %v635_v10, %s1185_s8 }
 0x333   :  { %527 = vrot.lane.b32.xlu0 %v520_v11, %s1175_s26  ;;  %v661_v13 = vpop.f32.mrf.mxu0 }
 0x349   :  { %v776_v12 = vpop.f32.mrf.mxu3 }
 0x34a   :  { %807 = vrot.lane.b32.xlu1 %v776_v12, %s1186_s16 }
 0x352   :  { %668 = vrot.lane.b32.xlu1 %v661_v13, %s1185_s8 }
 0x35b   :  { %v802_v14 = vpop.f32.mrf.mxu0 }
 0x35c   :  { %809 = vrot.lane.b32.xlu0 %v802_v14, %s1186_s16 }
 0x395   :  { %v526_v15 = vpop.permute.xlu1 %525 }
 0x396   :  { %532 = vst.msk [vmem:[#allocation2] sm:$0xff] %vm531_vm2, %v526_v15 }
 0x39d   :  { %v667_v18 = vpop.permute.xlu0 %666 }
 0x39e   :  { %673 = vst.msk [vmem:[#allocation2] sm:$0xff] %vm672_vm3, %v667_v18 }
 0x3a5   :  { %v528_v21 = vpop.permute.xlu0 %527 }
 0x3a6   :  { %533 = vst.msk [vmem:[#allocation2 + $0x8] sm:$0xff] %vm531_vm2, %v528_v21 }
 0x3bc   :  { %v808_v22 = vpop.permute.xlu1 %807 }
 0x3bd   :  { %814 = vst.msk [vmem:[#allocation2] sm:$0xff] %vm813_vm4, %v808_v22 }
 0x3c4   :  { %v669_v23 = vpop.permute.xlu1 %668  ;;  %v816_v24 = vld [vmem:[#allocation2] sm:$0xff] }
 0x3c5   :  { %674 = vst.msk [vmem:[#allocation2 + $0x8] sm:$0xff] %vm672_vm3, %v669_v23  ;;  %909 = vmatmul.msk.f32.vlgmr.msra.gmra.mxu1 %vm158_vm0, %v816_v24 }
 0x3ce   :  { %v810_v25 = vpop.permute.xlu0 %809 }
 0x3cf   :  { %815 = vst.msk [vmem:[#allocation2 + $0x8] sm:$0xff] %vm813_vm4, %v810_v25 }
 0x3d6   :  { %v817_v26 = vld [vmem:[#allocation2 + $0x8] sm:$0xff] }
 0x3d7   :  { %910 = vmatmul.msk.f32.gmra.mxu1 %vm158_vm0, %v817_v26 }
 0x442   :  { %v849_v28 = vpop.f32.mrf.mxu1 }
 0x443   :  { %v850_v29 = vadd.f32 %v938_v27, %v849_v28 }
 0x445   :  { %855 = vst.msk [vmem:[#allocation15] sm:$0xff] %vm158_vm0, %v850_v29 }
 0x454   :  { %v852_v30 = vpop.f32.mrf.mxu1 }
 0x455   :  { %v853_v31 = vadd.f32 %v938_v27, %v852_v30 }
 0x457   :  { %856 = vst.msk [vmem:[#allocation15 + $0x8] sm:$0xff] %vm158_vm0, %v853_v31 }
 0x458   :  { %869 = dma.vmem_to_hbm [thread:$0]  %s862_s19, 256, %s864_s21, [#allocation5], %s1174_s25, %s1174_s25, %s1175_s26  }
 0x459   :  { %1171 = dma.done.wait [#allocation5], 256  }
 0x45a   :  { %1172 = vsyncadd [#allocation5], 4294967040 }
 0x45b   :  { %874 = vsyncpa [#allocation4], 1 }
 0x45c   :  { %875 = vsyncpa [#allocation7], 1 }
 0x45d   :  { %876 = vsyncpa [#allocation10], 1 }
 0x45e   :  { %877 = vsyncpa [#allocation13], 1 }
 0x45f   :  { %878 = vsyncpa [#allocation5], 1 }

</bundles_post_ra>
